<compile_context>
chip_gen: v6e
topology: v6e:2x2x1
jax: 0.10.0
libtpu: 0.0.40
codegen_flags: <defaults>
</compile_context>

<pallas_src>
import jax
import jax.numpy as jnp
from jax.experimental import pallas as pl
from jax.experimental.pallas import tpu as pltpu

_EPS = 1e-5


# ----------------------------- Pallas kernels ------------------------------ #

def _conv1_kernel(p_ref, w_ref, shift_ref, o_ref):
    """out = relu(patches @ w_folded + shift).  (BN scale folded into w.)"""
    acc = jnp.dot(p_ref[...], w_ref[...], preferred_element_type=jnp.float32)
    o_ref[...] = jnp.maximum(acc + shift_ref[...], 0.0).astype(o_ref.dtype)


def _conv2_downsample_kernel(p_ref, w_ref, xs_ref, ws_ref, shift_ref, o_ref):
    """out = relu(patches2 @ w2 + x_strided @ w_shortcut + (shift2+shift_s))."""
    acc = jnp.dot(p_ref[...], w_ref[...], preferred_element_type=jnp.float32)
    acc = acc + jnp.dot(xs_ref[...], ws_ref[...],
                        preferred_element_type=jnp.float32)
    o_ref[...] = jnp.maximum(acc + shift_ref[...], 0.0).astype(o_ref.dtype)


def _conv2_identity_kernel(p_ref, w_ref, res_ref, shift_ref, o_ref):
    """out = relu(patches2 @ w2 + residual + shift2)."""
    acc = jnp.dot(p_ref[...], w_ref[...], preferred_element_type=jnp.float32)
    acc = acc + res_ref[...]
    o_ref[...] = jnp.maximum(acc + shift_ref[...], 0.0).astype(o_ref.dtype)


# ------------------------- tiled pallas_call wrapper ------------------------ #

def _run_tiled(kernel, args, row_tiled, m_pad, tm, cout_pad):
    """GEMM-style call tiled over M rows; weights/shifts fully resident.

    args       : list of 2-D arrays in kernel-argument order.
    row_tiled  : list of bools; True -> (tm, K) blocks indexed by grid i,
                 False -> full-array block (weights / shift vectors).
    """
    in_specs = []
    for a, tiled in zip(args, row_tiled):
        assert a.ndim == 2
        if tiled:
            in_specs.append(pl.BlockSpec((tm, a.shape[1]), lambda i: (i, 0)))
        else:
            in_specs.append(pl.BlockSpec(a.shape, lambda i: (0, 0)))
    return pl.pallas_call(
        kernel,
        out_shape=jax.ShapeDtypeStruct((m_pad, cout_pad), jnp.float32),
        grid=(m_pad // tm,),
        in_specs=in_specs,
        out_specs=pl.BlockSpec((tm, cout_pad), lambda i: (i, 0)),
        compiler_params=pltpu.CompilerParams(
            dimension_semantics=("parallel",),
            vmem_limit_bytes=48 * 1024 * 1024,  # safe on v7x's 64 MiB VMEM
        ),
    )(*args)


# ------------------------------ JAX-side glue ------------------------------ #

def _round_up(x, m):
    return (x + m - 1) // m * m


def _choose_tm(m):
    for tm in (512, 256, 128, 64, 32, 16, 8):
        if m >= tm:
            return tm
    return 8


def _pad_to(a, rows, cols):
    pr, pc = rows - a.shape[0], cols - a.shape[1]
    if pr == 0 and pc == 0:
        return a
    return jnp.pad(a, ((0, pr), (0, pc)))


def _im2col(x_nhwc, k, stride, pad):
    """(N,H,W,C) -> (N*Ho*Wo, k*k*C) with column order (ky, kx, c)."""
    n, h, w, c = x_nhwc.shape
    xp = jnp.pad(x_nhwc, ((0, 0), (pad, pad), (pad, pad), (0, 0)))
    ho = (h + 2 * pad - k) // stride + 1
    wo = (w + 2 * pad - k) // stride + 1
    cols = []
    for dy in range(k):
        for dx in range(k):
            cols.append(xp[:, dy:dy + stride * ho:stride,
                           dx:dx + stride * wo:stride, :])
    patches = jnp.concatenate(cols, axis=-1)
    return patches.reshape(n * ho * wo, k * k * c), (n, ho, wo)


def _fold_bn_into_w(w_hwio, bn):
    """Fold BN (gamma,beta,mean,var) into weight columns + a per-channel shift."""
    gamma, beta, mean, var = bn
    scale = gamma * jax.lax.rsqrt(var + _EPS)
    shift = beta - mean * scale
    return w_hwio * scale, shift


def basic_block_forward(x_nchw, params, stride):
    """Forward pass of BasicBlock. Input/output in NCHW (PyTorch convention)."""
    x = jnp.transpose(x_nchw, (0, 2, 3, 1)).astype(jnp.float32)  # -> NHWC
    n, h, w, cin = x.shape
    planes = params["w1"].shape[-1]
    cout_pad = _round_up(planes, 128)          # lane-dense output tiles

    w1f, sh1 = _fold_bn_into_w(params["w1"], params["bn1"])
    w2f, sh2 = _fold_bn_into_w(params["w2"], params["bn2"])

    # ---- conv1 (3x3, stride) + bn1 + relu ---------------------------------- #
    p1, (n_, ho, wo) = _im2col(x, 3, stride, 1)
    m = n_ * ho * wo
    tm = _choose_tm(m)
    m_pad = _round_up(m, tm)

    p1b = _pad_to(p1, m_pad, p1.shape[1]).astype(jnp.bfloat16)
    w1m = _pad_to(w1f.reshape(9 * cin, planes), 9 * cin, cout_pad).astype(jnp.bfloat16)
    sh1p = _pad_to(sh1.reshape(1, planes), 1, cout_pad)          # f32 epilogue

    out1 = _run_tiled(_conv1_kernel, [p1b, w1m, sh1p],
                      [True, False, False], m_pad, tm, cout_pad)
    out1_img = out1[:m, :planes].reshape(n, ho, wo, planes)

    # ---- conv2 (3x3, stride 1) + bn2 + shortcut + relu --------------------- #
    p2, _ = _im2col(out1_img, 3, 1, 1)
    p2b = _pad_to(p2, m_pad, p2.shape[1]).astype(jnp.bfloat16)
    w2m = _pad_to(w2f.reshape(9 * planes, planes), 9 * planes, cout_pad
                  ).astype(jnp.bfloat16)

    if stride != 1 or cin != planes:
        # downsample shortcut: 1x1 conv + BN, fused as a second GEMM
        wsf, shs = _fold_bn_into_w(params["ws"], params["bns"])
        xs = x[:, ::stride, ::stride, :].reshape(m, cin)
        xsb = _pad_to(xs, m_pad, cin).astype(jnp.bfloat16)
        wsm = _pad_to(wsf.reshape(cin, planes), cin, cout_pad).astype(jnp.bfloat16)
        sh_tot = _pad_to((sh2 + shs).reshape(1, planes), 1, cout_pad)
        out = _run_tiled(_conv2_downsample_kernel,
                         [p2b, w2m, xsb, wsm, sh_tot],
                         [True, False, True, False, False],
                         m_pad, tm, cout_pad)
    else:
        # identity shortcut: residual add in f32
        res = _pad_to(x.reshape(m, cin), m_pad, cout_pad)
        sh2p = _pad_to(sh2.reshape(1, planes), 1, cout_pad)
        out = _run_tiled(_conv2_identity_kernel,
                         [p2b, w2m, res, sh2p],
                         [True, False, True, False],
                         m_pad, tm, cout_pad)

    out = out[:m, :planes].reshape(n, ho, wo, planes)
    return jnp.transpose(out, (0, 3, 1, 2))                      # -> NCHW


# -------------------------- deterministic parameters ----------------------- #

def init_basic_block_params(key, in_planes, planes, stride):
    def conv_w(k, kh, kw, cin, cout):
        bound = 1.0 / jnp.sqrt(float(cin * kh * kw))
        return jax.random.uniform(k, (kh, kw, cin, cout), jnp.float32, -bound, bound)

    def bn_p(k, c):
        kg, kb, km, kv = jax.random.split(k, 4)
        gamma = 1.0 + 0.1 * jax.random.normal(kg, (c,), jnp.float32)
        beta = 0.1 * jax.random.normal(kb, (c,), jnp.float32)
        mean = 0.1 * jax.random.normal(km, (c,), jnp.float32)
        var = 0.5 + 0.1 * jnp.abs(jax.random.normal(kv, (c,), jnp.float32))
        return (gamma, beta, mean, var)

    k1, k2, k3, kb1, kb2, kb3 = jax.random.split(key, 6)
    params = {
        "w1": conv_w(k1, 3, 3, in_planes, planes),   # HWIO
        "bn1": bn_p(kb1, planes),
        "w2": conv_w(k2, 3, 3, planes, planes),
        "bn2": bn_p(kb2, planes),
    }
    if stride != 1 or in_planes != planes:
        params["ws"] = conv_w(k3, 1, 1, in_planes, planes)
        params["bns"] = bn_p(kb3, planes)
    return params


# ------------------------------ pure-JAX reference ------------------------- #

def _reference(x_nchw, params, stride, bf16_matmul):
    """Folded-BN reference. bf16_matmul=True mirrors the kernel's MXU dtype."""
    x = jnp.transpose(x_nchw, (0, 2, 3, 1)).astype(jnp.float32)
    in_dt = jnp.bfloat16 if bf16_matmul else jnp.float32

    def conv(inp, wf, s, pad):
        return jax.lax.conv_general_dilated(
            inp.astype(in_dt), wf.astype(in_dt), (s, s),
            [(pad, pad), (pad, pad)],
            dimension_numbers=("NHWC", "HWIO", "NHWC"),
            preferred_element_type=jnp.float32)

    w1f, sh1 = _fold_bn_into_w(params["w1"], params["bn1"])
    w2f, sh2 = _fold_bn_into_w(params["w2"], params["bn2"])
    out1 = jax.nn.relu(conv(x, w1f, stride, 1) + sh1)
    out2 = conv(out1, w2f, 1, 1) + sh2
    if "ws" in params:
        wsf, shs = _fold_bn_into_w(params["ws"], params["bns"])
        sc = conv(x, wsf, stride, 0) + shs
    else:
        sc = x
    return jnp.transpose(jax.nn.relu(out2 + sc), (0, 3, 1, 2))


# ----------------------------------- main ----------------------------------- #

if __name__ == "__main__":
    key = jax.random.PRNGKey(0)
    kx, kp, kx2, kp2 = jax.random.split(key, 4)
    batch, spatial = 2, 16

    # --- downsample path: stride 2, channel expansion ----------------------- #
    in_planes, planes, stride = 4, 8, 2
    x = jax.random.normal(kx, (batch, in_planes, spatial, spatial), jnp.float32)
    params = init_basic_block_params(kp, in_planes, planes, stride)

    out = jax.block_until_ready(basic_block_forward(x, params, stride))
    assert out.shape == (batch, planes, spatial // stride, spatial // stride), out.shape
    ref_bf16 = jax.block_until_ready(_reference(x, params, stride, bf16_matmul=True))
    ref_f32 = jax.block_until_ready(_reference(x, params, stride, bf16_matmul=False))
    assert jnp.allclose(out, ref_bf16, atol=1e-3, rtol=1e-3), "mismatch vs bf16 ref"
    assert jnp.allclose(out, ref_f32, atol=5e-2, rtol=5e-2), "mismatch vs f32 ref"

    # --- identity-shortcut path: stride 1, same channels -------------------- #
    in_planes2 = planes2 = 8
    x2 = jax.random.normal(kx2, (batch, in_planes2, spatial, spatial), jnp.float32)
    params2 = init_basic_block_params(kp2, in_planes2, planes2, 1)

    out2 = jax.block_until_ready(basic_block_forward(x2, params2, 1))
    assert out2.shape == (batch, planes2, spatial, spatial), out2.shape
    ref2_bf16 = _reference(x2, params2, 1, bf16_matmul=True)
    ref2_f32 = _reference(x2, params2, 1, bf16_matmul=False)
    assert jnp.allclose(out2, ref2_bf16, atol=1e-3, rtol=1e-3), "mismatch vs bf16 ref (id)"
    assert jnp.allclose(out2, ref2_f32, atol=5e-2, rtol=5e-2), "mismatch vs f32 ref (id)"

    print("KERNEL_OK")
</pallas_src>

<mosaic_0001>
module attributes {stable_mosaic.version = 11 : i64} {
  func.func @_conv1_kernel(%arg0: i32, %arg1: memref<128x36xbf16, #tpu.memory_space<vmem>>, %arg2: memref<36x128xbf16, #tpu.memory_space<vmem>>, %arg3: memref<1x128xf32, #tpu.memory_space<vmem>>, %arg4: memref<128x128xf32, #tpu.memory_space<vmem>>) attributes {dimension_semantics = [#tpu.dimension_semantics<parallel>], iteration_bounds = array<i64: 1>, scalar_prefetch = 0 : i64, scratch_operands = 0 : i64, tpu.core_type = #tpu.core_type<tc>, window_params = [{transform_indices = @transform_0, window_bounds = array<i64: 128, 36>}, {pipeline_mode = #tpu.pipeline_mode<synchronous>, transform_indices = @transform_1, window_bounds = array<i64: 36, 128>}, {pipeline_mode = #tpu.pipeline_mode<synchronous>, transform_indices = @transform_2, window_bounds = array<i64: 1, 128>}, {transform_indices = @transform_3, window_bounds = array<i64: 128, 128>}]} {
    %c0 = arith.constant 0 : index
    %c0_0 = arith.constant 0 : index
    %0 = vector.load %arg1[%c0, %c0_0] : memref<128x36xbf16, #tpu.memory_space<vmem>>, vector<128x36xbf16>
    %c0_1 = arith.constant 0 : index
    %c0_2 = arith.constant 0 : index
    %1 = vector.load %arg2[%c0_1, %c0_2] : memref<36x128xbf16, #tpu.memory_space<vmem>>, vector<36x128xbf16>
    %cst = arith.constant dense<0.000000e+00> : vector<128x128xf32>
    %2 = tpu.matmul %0, %1, %cst {dimension_numbers = #tpu.dot_dimension_numbers<[1], [0], [0], [1], [0, 0, 1, 1], [], []>} : vector<128x36xbf16>, vector<36x128xbf16>, vector<128x128xf32> -> vector<128x128xf32>
    %c0_3 = arith.constant 0 : index
    %c0_4 = arith.constant 0 : index
    %3 = vector.load %arg3[%c0_3, %c0_4] : memref<1x128xf32, #tpu.memory_space<vmem>>, vector<1x128xf32>
    %4 = vector.broadcast %3 : vector<1x128xf32> to vector<128x128xf32>
    %5 = arith.addf %2, %4 : vector<128x128xf32>
    %cst_5 = arith.constant 0.000000e+00 : f32
    %6 = vector.broadcast %cst_5 : f32 to vector<128x128xf32>
    %7 = arith.maximumf %5, %6 : vector<128x128xf32>
    %c0_6 = arith.constant 0 : index
    %c0_7 = arith.constant 0 : index
    %8 = vector.load %arg4[%c0_6, %c0_7] : memref<128x128xf32, #tpu.memory_space<vmem>>, vector<128x128xf32>
    tpu.vector_store %arg4[%c0_6, %c0_7], %7 {strides = array<i32>} : memref<128x128xf32, #tpu.memory_space<vmem>>, vector<128x128xf32>,
    return
  }
  func.func @transform_0(%arg0: i32) -> (i32, i32) {
    %c0_i32 = arith.constant 0 : i32
    %c0_i32_0 = arith.constant 0 : i32
    return %arg0, %c0_i32 : i32, i32
  }
  func.func @transform_1(%arg0: i32) -> (i32, i32) {
    %c0_i32 = arith.constant 0 : i32
    %c0_i32_0 = arith.constant 0 : i32
    %c0_i32_1 = arith.constant 0 : i32
    return %c0_i32, %c0_i32_0 : i32, i32
  }
  func.func @transform_2(%arg0: i32) -> (i32, i32) {
    %c0_i32 = arith.constant 0 : i32
    %c0_i32_0 = arith.constant 0 : i32
    %c0_i32_1 = arith.constant 0 : i32
    return %c0_i32, %c0_i32_0 : i32, i32
  }
  func.func @transform_3(%arg0: i32) -> (i32, i32) {
    %c0_i32 = arith.constant 0 : i32
    %c0_i32_0 = arith.constant 0 : i32
    return %arg0, %c0_i32 : i32, i32
  }
}

</mosaic_0001>

<bundles_post_ra>
// kernel: tpu_custom_call.1
= control target key start
LH: loop header
LB: loop body
LE: loop exit
PB: predicated region body
PF: predicated region fallthrough
CT: control target
= control target key end

     0   :  { %vm124_vm0 = vcmask 1041408   ;;  %vm99_vm1 = vcmask 293888   ;;  %s440_s0 = inlined_call_operand.vmem [shape: bf16[128,36], index: 0, kind: input, shape index: {}]   ;;  %s441_s1 = inlined_call_operand.vmem [shape: bf16[36,128], index: 1, kind: input, shape index: {}]   ;;  %s442_s2 = inlined_call_operand.vmem [shape: f32[1,128], index: 2, kind: input, shape index: {}]   ;;  %s443_s3 = inlined_call_operand.hbm [shape: f32[128,128], index: 3, kind: output, shape index: {}]  }
   0x1   :  { %v337_v0 = vld [vmem:[%s441_s1 + $0x10] ss:$0 sps:$4 sm:$0x33]   ;;  %v338_v1 = vld [vmem:[%s441_s1 + $0x8] sm:$0xff]   ;;  %v339_v3 = vld [vmem:[%s441_s1] sm:$0xff]  }
   0x2   :  { %332 = vmatprep.subr.msk.bf16.mxu0 %vm124_vm0, %v337_v0  ;;  %333 = vmatprep.subr.msk.bf16.mxu1 %vm124_vm0, %v337_v0  ;;  %v126_v2 = vsel %vm124_vm0, %v337_v0, 0  ;;  %v340_v4 = vld [vmem:[%s440_s0] sm:$0xff]   ;;  %v342_v6 = vld [vmem:[%s440_s0 + $0x8] sm:$0xff]   ;;  %v344_v8 = vld [vmem:[%s440_s0 + $0x10] sm:$0xff]  }
   0x3   :  { %305 = vmatpush3.bf16.msra.mxu0 %v126_v2  ;;  %329 = vmatpush3.bf16.msra.mxu1 %v126_v2  ;;  %v341_v5 = vld [vmem:[%s440_s0 + $0x20] sm:$0xff]   ;;  %v343_v7 = vld [vmem:[%s440_s0 + $0x28] sm:$0xff]   ;;  %v345_v9 = vld [vmem:[%s440_s0 + $0x30] sm:$0xff]  }
   0x4   :  { %306 = vmatprep.subr.bf16.mxu0 %v338_v1  ;;  %327 = vmatprep.subr.bf16.mxu1 %v338_v1 }
   0x5   :  { %310 = vmatprep.mubr.msk.bf16.mxu0 %vm99_vm1, %v340_v4  ;;  %318 = vmatprep.mubr.msk.bf16.mxu1 %vm99_vm1, %v341_v5 }
   0x7   :  { %307 = vmatpush3.bf16.msra.mxu0 %v338_v1  ;;  %330 = vmatpush3.bf16.msra.mxu1 %v338_v1 }
   0x8   :  { %308 = vmatprep.subr.bf16.mxu0 %v339_v3  ;;  %328 = vmatprep.subr.bf16.mxu1 %v339_v3 }
   0xb   :  { %309 = vmatpush3.bf16.msra.mxu0 %v339_v3  ;;  %331 = vmatpush3.bf16.msra.mxu1 %v339_v3 }
   0xc   :  { %8 = vsyncpa [#allocation3], 0  ;;  %v346_v10 = vld [vmem:[%s440_s0 + $0x18] sm:$0xff]   ;;  %v273_v12 = vld [vmem:[%s442_s2] ss:$0 sm:$0xff] }
   0xd   :  { %v347_v11 = vld [vmem:[%s440_s0 + $0x38] sm:$0xff]   ;;  %s370_s0 = smov [#allocation2]  }
   0xe   :  { %311 = vmatmul.mubr.msk.bf16.vlgmr.msra.gmra.mxu0 %vm99_vm1, %v342_v6  ;;  %319 = vmatmul.mubr.msk.bf16.vlgmr.msra.gmra.mxu1 %vm99_vm1, %v343_v7  ;;  %s262_s2 = sshll.u32 %s370_s0, 4  ;;  %s263_s2 = int_to_ptr.vmem [resolvable:$true] %s262_s2 }
   0xf   :  { %314 = vmatprep.mubr.msk.bf16.mxu0 %vm99_vm1, %v344_v8  ;;  %322 = vmatprep.mubr.msk.bf16.mxu1 %vm99_vm1, %v345_v9  ;;  %s348_s8 = scalar_lea.vmem %s263_s2, 2048  ;;  %p353_p1 = scmp.lt.s32.totalorder %s263_s2, %s263_s2 }
  0x10   :  { %p349_p0 = scmp.ne.s32.totalorder %s263_s2, %s348_s8  ;;  %p354_p2 = scmp.lt.s32.totalorder %s348_s8, %s348_s8 }
  0x12   :  { %p355_p3 = por %p354_p2, %p353_p1 }
  0x14   :  { %p356_p4 = pnand %p355_p3, %p349_p0 }
  0x16   :  { %315 = vmatmul.mubr.msk.bf16.gmra.mxu0 %vm99_vm1, %v346_v10  ;;  %323 = vmatmul.mubr.msk.bf16.gmra.mxu1 %vm99_vm1, %v347_v11 }
  0xce   :  { %v312_v13 = vpop.f32.mrf.mxu0  ;;  %v320_v14 = vpop.f32.mrf.mxu1 }
  0xcf   :  { %v171_v15 = vadd.f32 %v312_v13, %v273_v12  ;;  %v203_v16 = vadd.f32 %v320_v14, %v273_v12 }
  0xd0   :  { %v162_v17 = vpop.f32.mrf.mxu0  ;;  %v194_v18 = vpop.f32.mrf.mxu1 }
  0xd1   :  { %v227_v19 = vmax.f32 %v171_v15, 0.0  ;;  %v235_v20 = vmax.f32 %v203_v16, 0.0  ;;  %v163_v21 = vadd.f32 %v273_v12, %v162_v17  ;;  %v195_v22 = vadd.f32 %v273_v12, %v194_v18 }
  0xd2   :  { %v313_v23 = vpop.f32.mrf.mxu0  ;;  %v321_v24 = vpop.f32.mrf.mxu1 }
  0xd3   :  { %243 = vst [vmem:[#allocation2 + $0x10] sm:$0xff] %v227_v19  ;;  %251 = vst [vmem:[#allocation2 + $0x50] sm:$0xff] %v235_v20  ;;  %v225_v25 = vmax.f32 %v163_v21, 0.0  ;;  %v233_v26 = vmax.f32 %v195_v22, 0.0  ;;  %v174_v27 = vadd.f32 %v313_v23, %v273_v12  ;;  %v206_v28 = vadd.f32 %v321_v24, %v273_v12 }
  0xd4   :  { %v165_v29 = vpop.f32.mrf.mxu0  ;;  %v197_v30 = vpop.f32.mrf.mxu1 }
  0xd5   :  { %241 = vst [vmem:[#allocation2] sm:$0xff] %v225_v25  ;;  %249 = vst [vmem:[#allocation2 + $0x40] sm:$0xff] %v233_v26  ;;  %v228_v31 = vmax.f32 %v174_v27, 0.0  ;;  %v236_v32 = vmax.f32 %v206_v28, 0.0  ;;  %v166_v33 = vadd.f32 %v273_v12, %v165_v29  ;;  %v198_v34 = vadd.f32 %v273_v12, %v197_v30 }
  0xd6   :  { %v316_v35 = vpop.f32.mrf.mxu0  ;;  %v324_v36 = vpop.f32.mrf.mxu1 }
  0xd7   :  { %244 = vst [vmem:[#allocation2 + $0x18] sm:$0xff] %v228_v31  ;;  %252 = vst [vmem:[#allocation2 + $0x58] sm:$0xff] %v236_v32  ;;  %v226_v37 = vmax.f32 %v166_v33, 0.0  ;;  %v234_v38 = vmax.f32 %v198_v34, 0.0  ;;  %v187_v39 = vadd.f32 %v316_v35, %v273_v12  ;;  %v219_v40 = vadd.f32 %v324_v36, %v273_v12 }
  0xd8   :  { %v178_v41 = vpop.f32.mrf.mxu0  ;;  %v210_v42 = vpop.f32.mrf.mxu1 }
  0xd9   :  { %242 = vst [vmem:[#allocation2 + $0x8] sm:$0xff] %v226_v37  ;;  %250 = vst [vmem:[#allocation2 + $0x48] sm:$0xff] %v234_v38  ;;  %v231_v43 = vmax.f32 %v187_v39, 0.0  ;;  %v239_v44 = vmax.f32 %v219_v40, 0.0  ;;  %v179_v45 = vadd.f32 %v273_v12, %v178_v41  ;;  %v211_v46 = vadd.f32 %v273_v12, %v210_v42 }
  0xda   :  { %v317_v47 = vpop.f32.mrf.mxu0  ;;  %v325_v48 = vpop.f32.mrf.mxu1 }
  0xdb   :  { %247 = vst [vmem:[#allocation2 + $0x30] sm:$0xff] %v231_v43  ;;  %255 = vst [vmem:[#allocation2 + $0x70] sm:$0xff] %v239_v44  ;;  %v229_v49 = vmax.f32 %v179_v45, 0.0  ;;  %v237_v50 = vmax.f32 %v211_v46, 0.0  ;;  %v190_v51 = vadd.f32 %v317_v47, %v273_v12  ;;  %v222_v52 = vadd.f32 %v325_v48, %v273_v12 }
  0xdc   :  { %v181_v53 = vpop.f32.mrf.mxu0  ;;  %v213_v54 = vpop.f32.mrf.mxu1 }
  0xdd   :  { %245 = vst [vmem:[#allocation2 + $0x20] sm:$0xff] %v229_v49  ;;  %253 = vst [vmem:[#allocation2 + $0x60] sm:$0xff] %v237_v50  ;;  %v232_v55 = vmax.f32 %v190_v51, 0.0  ;;  %v240_v56 = vmax.f32 %v222_v52, 0.0  ;;  %v182_v57 = vadd.f32 %v273_v12, %v181_v53  ;;  %v214_v58 = vadd.f32 %v273_v12, %v213_v54 }
  0xdf   :  { %248 = vst [vmem:[#allocation2 + $0x38] sm:$0xff] %v232_v55  ;;  %256 = vst [vmem:[#allocation2 + $0x78] sm:$0xff] %v240_v56  ;;  %v230_v59 = vmax.f32 %v182_v57, 0.0  ;;  %v238_v60 = vmax.f32 %v214_v58, 0.0 }
  0xe1   :  { %246 = vst [vmem:[#allocation2 + $0x28] sm:$0xff] %v230_v59  ;;  %254 = vst [vmem:[#allocation2 + $0x68] sm:$0xff] %v238_v60 }
  0xe2   :  { %359 = shalt.err (!%p356_p4)
}
  0xe3   :  { %s371_s9 = smov 128   ;;  %s372_s10 = smov 8  }
  0xe4   :  { %268 = dma.vmem_to_hbm [thread:$0]  %s263_s2, 2048, %s443_s3, [#allocation3], %s371_s9, %s371_s9, %s372_s10  }
  0xe5   :  { %368 = dma.done.wait [#allocation3], 2048  }
  0xe6   :  { %369 = vsyncadd [#allocation3], 4294965248 }
  0xe7   :  { %272 = vsyncpa [#allocation3], 1 }

</bundles_post_ra>
